<compile_context>
chip_gen: v7x
topology: tpu7x:2x2x1
jax: 0.10.0
libtpu: 0.0.40
codegen_flags: <defaults>
</compile_context>

<pallas_src>
import jax
import jax.numpy as jnp
from jax.experimental import pallas as pl
from jax.experimental.pallas import tpu as pltpu

IN_FEATURES = 20
HIDDEN = 30
OUT_FEATURES = 50
LANE = 128  # lane-dense padded output width


def simple_params_kernel(x_ref, w_ref, b_ref, o_ref):
    # Single fused matmul + bias:  out = x @ W_combined + b_combined
    o_ref[...] = (
        jnp.dot(x_ref[...], w_ref[...], preferred_element_type=jnp.float32)
        + b_ref[...]  # (1, LANE) broadcasts over the row tile (VPU add)
    )


def _round_up(n, m):
    return ((n + m - 1) // m) * m


def simple_params_forward(x, weight, bias, large_tensor, dup_large_tensor,
                          *, block_rows=512):
    """x: [B, 20], weight: [30, 20], bias: [30], large/dup: [30, 50] -> [B, 50]"""
    B = x.shape[0]

    # ---- Parameter-only algebraic fold (tiny [30,50]-sized prep) -----------
    m = large_tensor + dup_large_tensor                      # [30, 50]
    w_combined = weight.T @ m                                # [20, 50]
    b_combined = (bias + 1.0) @ m                            # [50]

    # ---- Lane-dense padding of the output/N dimension (50 -> 128) ----------
    w_pad = jnp.zeros((IN_FEATURES, LANE), jnp.float32).at[:, :OUT_FEATURES].set(w_combined)
    b_pad = jnp.zeros((1, LANE), jnp.float32).at[:, :OUT_FEATURES].set(b_combined)

    # ---- Batch tiling: big tiles for large B, minimal (8-row) padding else --
    tm = block_rows if B >= block_rows else _round_up(max(B, 1), 8)
    B_pad = _round_up(B, tm)
    if B_pad != B:
        x = jnp.pad(x, ((0, B_pad - B), (0, 0)))

    grid = (B_pad // tm,)

    cost = pl.CostEstimate(
        flops=2 * B_pad * IN_FEATURES * LANE,
        transcendentals=0,
        bytes_accessed=4 * (B_pad * IN_FEATURES + IN_FEATURES * LANE
                            + LANE + B_pad * LANE),
    )

    out = pl.pallas_call(
        simple_params_kernel,
        out_shape=jax.ShapeDtypeStruct((B_pad, LANE), jnp.float32),
        grid=grid,
        in_specs=[
            pl.BlockSpec((tm, IN_FEATURES), lambda i: (i, 0)),    # x tile, pipelined
            pl.BlockSpec((IN_FEATURES, LANE), lambda i: (0, 0)),  # W_combined, VMEM-resident
            pl.BlockSpec((1, LANE), lambda i: (0, 0)),            # b_combined, VMEM-resident
        ],
        out_specs=pl.BlockSpec((tm, LANE), lambda i: (i, 0)),
        compiler_params=pltpu.CompilerParams(
            dimension_semantics=("parallel",),   # megacore-shardable batch axis
        ),
        cost_estimate=cost,
    )(x, w_pad, b_pad)

    return out[:B, :OUT_FEATURES]


def _reference(x, weight, bias, large_tensor, dup_large_tensor):
    # Original (unfused) math, matching the PyTorch module exactly.
    return (x @ weight.T + bias + 1.0) @ (large_tensor + dup_large_tensor)


if __name__ == "__main__":
    key = jax.random.PRNGKey(0)
    k_x, k_w, k_b, k_lt, k_dlt, k_x2 = jax.random.split(key, 6)

    # Deterministic parameter init (shapes from the module __init__).
    # nn.Linear(20, 30): weight [30, 20], bias [30]
    weight = jax.random.normal(k_w, (HIDDEN, IN_FEATURES), dtype=jnp.float32) * 0.1
    bias = jax.random.normal(k_b, (HIDDEN,), dtype=jnp.float32) * 0.1
    # torch.rand -> uniform [0, 1)
    large_tensor = jax.random.uniform(k_lt, (HIDDEN, OUT_FEATURES), dtype=jnp.float32)
    dup_large_tensor = jax.random.uniform(k_dlt, (HIDDEN, OUT_FEATURES), dtype=jnp.float32)

    fwd = jax.jit(simple_params_forward, static_argnames=("block_rows",))

    # --- Small-batch check (single tile) ------------------------------------
    B = 8
    x = jax.random.normal(k_x, (B, IN_FEATURES), dtype=jnp.float32)
    out = jax.block_until_ready(
        fwd(x, weight, bias, large_tensor, dup_large_tensor))
    ref = _reference(x, weight, bias, large_tensor, dup_large_tensor)
    assert out.shape == (B, OUT_FEATURES)
    # The fold reassociates the two matmuls -> tiny f32 rounding differences.
    assert jnp.allclose(out, ref, atol=1e-4, rtol=1e-4), "mismatch vs reference (B=8)"

    # --- Multi-tile check (grid over batch + ragged last tile) --------------
    B2 = 300
    x2 = jax.random.normal(k_x2, (B2, IN_FEATURES), dtype=jnp.float32)
    out2 = jax.block_until_ready(
        fwd(x2, weight, bias, large_tensor, dup_large_tensor, block_rows=128))
    ref2 = _reference(x2, weight, bias, large_tensor, dup_large_tensor)
    assert out2.shape == (B2, OUT_FEATURES)
    assert jnp.allclose(out2, ref2, atol=1e-4, rtol=1e-4), "mismatch vs reference (B=300)"

    print("KERNEL_OK")
</pallas_src>

<mosaic_0001>
module attributes {stable_mosaic.version = 11 : i64} {
  func.func @simple_params_kernel(%arg0: i32, %arg1: memref<8x20xf32, #tpu.memory_space<vmem>>, %arg2: memref<20x128xf32, #tpu.memory_space<vmem>>, %arg3: memref<1x128xf32, #tpu.memory_space<vmem>>, %arg4: memref<8x128xf32, #tpu.memory_space<vmem>>) attributes {dimension_semantics = [#tpu.dimension_semantics<parallel>], iteration_bounds = array<i64: 1>, scalar_prefetch = 0 : i64, scratch_operands = 0 : i64, tpu.core_type = #tpu.core_type<tc>, window_params = [{transform_indices = @transform_0, window_bounds = array<i64: 8, 20>}, {pipeline_mode = #tpu.pipeline_mode<synchronous>, transform_indices = @transform_1, window_bounds = array<i64: 20, 128>}, {pipeline_mode = #tpu.pipeline_mode<synchronous>, transform_indices = @transform_2, window_bounds = array<i64: 1, 128>}, {transform_indices = @transform_3, window_bounds = array<i64: 8, 128>}]} {
    %c0 = arith.constant 0 : index
    %c0_0 = arith.constant 0 : index
    %0 = vector.load %arg1[%c0, %c0_0] : memref<8x20xf32, #tpu.memory_space<vmem>>, vector<8x20xf32>
    %c0_1 = arith.constant 0 : index
    %c0_2 = arith.constant 0 : index
    %1 = vector.load %arg2[%c0_1, %c0_2] : memref<20x128xf32, #tpu.memory_space<vmem>>, vector<20x128xf32>
    %cst = arith.constant dense<0.000000e+00> : vector<8x128xf32>
    %2 = tpu.matmul %0, %1, %cst {dimension_numbers = #tpu.dot_dimension_numbers<[1], [0], [0], [1], [0, 0, 1, 1], [], []>} : vector<8x20xf32>, vector<20x128xf32>, vector<8x128xf32> -> vector<8x128xf32>
    %c0_3 = arith.constant 0 : index
    %c0_4 = arith.constant 0 : index
    %3 = vector.load %arg3[%c0_3, %c0_4] : memref<1x128xf32, #tpu.memory_space<vmem>>, vector<1x128xf32>
    %4 = vector.broadcast %3 : vector<1x128xf32> to vector<8x128xf32>
    %5 = arith.addf %2, %4 : vector<8x128xf32>
    %c0_5 = arith.constant 0 : index
    %c0_6 = arith.constant 0 : index
    %6 = vector.load %arg4[%c0_5, %c0_6] : memref<8x128xf32, #tpu.memory_space<vmem>>, vector<8x128xf32>
    tpu.vector_store %arg4[%c0_5, %c0_6], %5 {strides = array<i32>} : memref<8x128xf32, #tpu.memory_space<vmem>>, vector<8x128xf32>,
    return
  }
  func.func @transform_0(%arg0: i32) -> (i32, i32) {
    %c0_i32 = arith.constant 0 : i32
    %c0_i32_0 = arith.constant 0 : i32
    return %arg0, %c0_i32 : i32, i32
  }
  func.func @transform_1(%arg0: i32) -> (i32, i32) {
    %c0_i32 = arith.constant 0 : i32
    %c0_i32_0 = arith.constant 0 : i32
    %c0_i32_1 = arith.constant 0 : i32
    return %c0_i32, %c0_i32_0 : i32, i32
  }
  func.func @transform_2(%arg0: i32) -> (i32, i32) {
    %c0_i32 = arith.constant 0 : i32
    %c0_i32_0 = arith.constant 0 : i32
    %c0_i32_1 = arith.constant 0 : i32
    return %c0_i32, %c0_i32_0 : i32, i32
  }
  func.func @transform_3(%arg0: i32) -> (i32, i32) {
    %c0_i32 = arith.constant 0 : i32
    %c0_i32_0 = arith.constant 0 : i32
    return %arg0, %c0_i32 : i32, i32
  }
}

</mosaic_0001>

<bundles_post_ra>
// kernel: simple_params_forward.1
= control target key start
LH: loop header
LB: loop body
LE: loop exit
PB: predicated region body
PF: predicated region fallthrough
CT: control target
= control target key end

     0   :  { %v166_v2 = vmov 0.0|0.0   ;;  %vm167_vm0 = vmmov 0   ;;  %v168_v4 = vmov 0.0   ;;  %s217_s0 = inlined_call_operand.vmem [shape: f32[8,20], index: 0, kind: input, shape index: {}]   ;;  %s218_s1 = inlined_call_operand.vmem [shape: f32[20,128], index: 1, kind: input, shape index: {}]   ;;  %s219_s2 = inlined_call_operand.vmem [shape: f32[1,128], index: 2, kind: input, shape index: {}]   ;;  %s220_s3 = inlined_call_operand.hbm [shape: f32[8,128], index: 3, kind: output, shape index: {}]  }
   0x1   :  { %v16_v0 = vld [vmem:[%s218_s1] sm:$0xff]  ;;  %v17_v1 = vld [vmem:[%s218_s1 + $0x8] sm:$0xff]  ;;  %135 = vmatprep.subr.bf16.mxu0 %v166_v2  ;;  %132 = vmatprep.mubr.msk.f32.mxu0 %vm167_vm0, %v168_v4 }
   0x2   :  { %v136_v3 = vpack.c.bf16 %v17_v1, %v16_v0 }
   0x3   :  { %8 = vsyncpa [#allocation3], 0  ;;  %v18_v5 = vld [vmem:[%s218_s1 + $0x10] sm:$0xf]  ;;  %vm30_vm1 = vcmask 1043456   ;;  %v15_v6 = vld [vmem:[%s217_s0] sm:$0xff] }
   0x4   :  { %137 = vmatpush3.bf16.msra.mxu0 %v136_v3  ;;  %vm26_vm2 = vcmask 162816   ;;  %v119_v7 = vld [vmem:[%s219_s2] ss:$0 sm:$0xff]  ;;  %s169_s22 = smov [#allocation2]  }
   0x5   :  { %130 = vmatprep.subr.mxu0 %v168_v4  ;;  %s111_s23 = sshll.u32 %s169_s22, 4  ;;  %s112_s23 = int_to_ptr.vmem [resolvable:$true] %s111_s23 }
   0x6   :  { %s142_s1 = scalar_lea.vmem %s112_s23, 128  ;;  %p147_p1 = scmp.lt.s32.totalorder %s112_s23, %s112_s23 }
   0x7   :  { %p143_p0 = scmp.ne.s32.totalorder %s112_s23, %s142_s1  ;;  %p148_p2 = scmp.lt.s32.totalorder %s142_s1, %s142_s1 }
   0x8   :  { %131 = vmatpush3.msk.msra.mxu0 %vm30_vm1, %v18_v5 }
   0x9   :  { %133 = vmatmul.mubr.msk.f32.vlgmr.msra.gmra.mrb[0].mxu0 %vm26_vm2, %v15_v6  ;;  %p149_p3 = por %p148_p2, %p147_p1 }
   0xb   :  { %p150_p4 = pnand %p149_p3, %p143_p0 }
  0xdc   :  { %v100_v8 = vpop.f32.mrb[0].mxu0 }
  0xdd   :  { %v101_v9 = vadd.f32 %v119_v7, %v100_v8  ;;  %v134_v10 = vpop.f32.mrb[1].mxu0 }
  0xdf   :  { %104 = vst [vmem:[#allocation2] sm:$0xff] %v101_v9 }
  0xe0   :  { %153 = shalt.err (!%p150_p4)
}
  0xe1   :  { %s154_s25 = scalar_lea.hbm %s220_s3, 128 }
  0xe2   :  { %p155_p5 = scmp.ne.s32.totalorder %s220_s3, %s154_s25  ;;  %p158_p6 = scmp.lt.u32.totalorder %s154_s25, %s220_s3 }
  0xe4   :  { %p160_p7 = pnand %p158_p6, %p155_p5 }
  0xe6   :  { %163 = shalt.err (!%p160_p7)
}
  0xe7   :  { %114 = dma.vmem_to_hbm [thread:$0]  %s112_s23, 128, %s220_s3, [#allocation3]  }
  0xe8   :  { %164 = dma.done.wait [#allocation3], 128  }
  0xe9   :  { %165 = vsyncadd [#allocation3], 4294967168 }
  0xea   :  { %118 = vsyncpa [#allocation3], 1 }

</bundles_post_ra>
